<compile_context>
chip_gen: v6e
topology: v6e:2x2x1
jax: 0.10.0
libtpu: 0.0.40
codegen_flags: <defaults>
</compile_context>

<pallas_src>
import jax
import jax.numpy as jnp
from jax.experimental import pallas as pl
from jax.experimental.pallas import tpu as pltpu


def _linear_kernel(x_ref, wt_ref, o_ref):
    # x_ref: (TM, IN), wt_ref: (IN, OUT) -> o_ref: (TM, OUT)
    o_ref[...] = jnp.dot(
        x_ref[...], wt_ref[...], preferred_element_type=jnp.float32
    ).astype(o_ref.dtype)


def _cost_estimate(batch, in_f, out_f, itemsize):
    return pl.CostEstimate(
        flops=2 * batch * in_f * out_f,
        transcendentals=0,
        bytes_accessed=itemsize * (batch * in_f + batch * out_f + in_f * out_f),
    )


def _vmem_budget_bytes():
    """Generation-aware budget for the gridless (whole-array-in-VMEM) path."""
    try:
        cap = pltpu.get_tpu_info().vmem_capacity_bytes
    except Exception:
        cap = 64 * 1024 * 1024  # conservative: v7x physical VMEM per core
    # Leave generous headroom for compiler scratch / other buffers.
    return cap // 4


def _linear_whole(x, w_t, vmem_limit_bytes):
    """Gridless path: everything resident in VMEM, single kernel body."""
    B, IN = x.shape
    OUT = w_t.shape[1]
    return pl.pallas_call(
        _linear_kernel,
        out_shape=jax.ShapeDtypeStruct((B, OUT), x.dtype),
        in_specs=[
            pl.BlockSpec(memory_space=pltpu.MemorySpace.VMEM),
            pl.BlockSpec(memory_space=pltpu.MemorySpace.VMEM),
        ],
        out_specs=pl.BlockSpec(memory_space=pltpu.MemorySpace.VMEM),
        compiler_params=pltpu.CompilerParams(
            vmem_limit_bytes=int(vmem_limit_bytes)
        ),
        cost_estimate=_cost_estimate(B, IN, OUT, jnp.dtype(x.dtype).itemsize),
    )(x, w_t)


def _linear_tiled(x, w_t, tm):
    """Batch-tiled path: grid over batch, weight resident, parallel semantics.

    Caller guarantees x.shape[0] % tm == 0.
    """
    B, IN = x.shape
    OUT = w_t.shape[1]
    return pl.pallas_call(
        _linear_kernel,
        out_shape=jax.ShapeDtypeStruct((B, OUT), x.dtype),
        grid_spec=pltpu.PrefetchScalarGridSpec(
            num_scalar_prefetch=0,
            grid=(B // tm,),
            in_specs=[
                pl.BlockSpec((tm, IN), lambda i: (i, 0)),
                pl.BlockSpec((IN, OUT), lambda i: (0, 0)),  # weight stays resident
            ],
            out_specs=pl.BlockSpec((tm, OUT), lambda i: (i, 0)),
        ),
        compiler_params=pltpu.CompilerParams(
            dimension_semantics=("parallel",),
        ),
        cost_estimate=_cost_estimate(B, IN, OUT, jnp.dtype(x.dtype).itemsize),
    )(x, w_t)


def linear_no_bias(x, w, *, tm=4096, max_vmem_bytes=None):
    """x: (B, IN) f32, w: (OUT, IN) f32 (PyTorch layout) -> (B, OUT) = x @ w.T."""
    B, IN = x.shape
    OUT, IN_w = w.shape
    assert IN == IN_w, "weight in_features mismatch"
    assert tm > 0 and tm % 8 == 0, "tm must be a positive multiple of 8 (f32 sublane tiling)"

    # One-time weight transpose outside the kernel (weights are static).
    w_t = jnp.transpose(w)  # (IN, OUT)

    itemsize = jnp.dtype(x.dtype).itemsize
    footprint = itemsize * (B * IN + B * OUT + IN * OUT)
    budget = _vmem_budget_bytes() if max_vmem_bytes is None else max_vmem_bytes

    if footprint <= budget:
        # Whole problem fits comfortably in VMEM: skip the grid/pipeline
        # machinery entirely.  vmem_limit_bytes raised past v5e's 16 MiB
        # scoped default, capped well under any generation's physical VMEM.
        limit = max(footprint * 2, 1 << 20)
        limit = min(max(limit, budget * 2), 48 * 1024 * 1024)
        return _linear_whole(x, w_t, limit)

    # Large-batch regime: pad B up to a multiple of tm so the tiled,
    # pipelined path always applies; slice the result back.
    pad = (-B) % tm
    x_p = jnp.pad(x, ((0, pad), (0, 0))) if pad else x
    y = _linear_tiled(x_p, w_t, tm)
    return y[:B] if pad else y


if __name__ == "__main__":
    key = jax.random.PRNGKey(0)
    k_x, k_w, k_x2 = jax.random.split(key, 3)

    batch, in_features, out_features = 8, 10, 10

    # Deterministic parameter init (matches nn.Linear weight shape (out, in)).
    bound = 1.0 / (in_features ** 0.5)
    w = jax.random.uniform(
        k_w, (out_features, in_features), jnp.float32, -bound, bound
    )
    x = jax.random.normal(k_x, (batch, in_features), jnp.float32)

    # Small batch -> gridless whole-array-in-VMEM path.
    y = linear_no_bias(x, w)
    jax.block_until_ready(y)
    y_ref = x @ w.T
    assert y.shape == (batch, out_features)
    assert jnp.allclose(y, y_ref, atol=1e-5, rtol=1e-5)

    # Exercise the tiled path (forced via a tiny VMEM budget) including the
    # non-multiple-of-tm padding logic, at small shapes: B=200, tm=64.
    big_batch = 200
    x_big = jax.random.normal(k_x2, (big_batch, in_features), jnp.float32)
    y_big = linear_no_bias(x_big, w, tm=64, max_vmem_bytes=0)
    jax.block_until_ready(y_big)
    y_big_ref = x_big @ w.T
    assert y_big.shape == (big_batch, out_features)
    assert jnp.allclose(y_big, y_big_ref, atol=1e-5, rtol=1e-5)

    print("KERNEL_OK")
</pallas_src>

<mosaic_0001>
module attributes {stable_mosaic.version = 11 : i64} {
  func.func @_linear_kernel(%arg0: memref<8x10xf32, #tpu.memory_space<vmem>>, %arg1: memref<10x10xf32, #tpu.memory_space<vmem>>, %arg2: memref<8x10xf32, #tpu.memory_space<vmem>>) attributes {dimension_semantics = [], scalar_prefetch = 0 : i64, scratch_operands = 0 : i64, tpu.core_type = #tpu.core_type<tc>} {
    %c0 = arith.constant 0 : index
    %c0_0 = arith.constant 0 : index
    %0 = vector.load %arg0[%c0, %c0_0] : memref<8x10xf32, #tpu.memory_space<vmem>>, vector<8x10xf32>
    %c0_1 = arith.constant 0 : index
    %c0_2 = arith.constant 0 : index
    %1 = vector.load %arg1[%c0_1, %c0_2] : memref<10x10xf32, #tpu.memory_space<vmem>>, vector<10x10xf32>
    %cst = arith.constant dense<0.000000e+00> : vector<8x10xf32>
    %2 = tpu.matmul %0, %1, %cst {dimension_numbers = #tpu.dot_dimension_numbers<[1], [0], [0], [1], [0, 0, 1, 1], [], []>} : vector<8x10xf32>, vector<10x10xf32>, vector<8x10xf32> -> vector<8x10xf32>
    %c0_3 = arith.constant 0 : index
    %c0_4 = arith.constant 0 : index
    %3 = vector.load %arg2[%c0_3, %c0_4] : memref<8x10xf32, #tpu.memory_space<vmem>>, vector<8x10xf32>
    tpu.vector_store %arg2[%c0_3, %c0_4], %2 {strides = array<i32>} : memref<8x10xf32, #tpu.memory_space<vmem>>, vector<8x10xf32>,
    return
  }
}

</mosaic_0001>

<bundles_post_ra>
// kernel: tpu_custom_call.1
= control target key start
LH: loop header
LB: loop body
LE: loop exit
PB: predicated region body
PF: predicated region fallthrough
CT: control target
= control target key end

     0   :  { %7 = vsyncpa [#allocation3], 0  ;;  %s252_s0 = inlined_call_operand.hbm [shape: f32[8,10], index: 0, kind: input, shape index: {}]   ;;  %s253_s1 = inlined_call_operand.hbm [shape: f32[10,10], index: 1, kind: input, shape index: {}]   ;;  %s254_s2 = inlined_call_operand.hbm [shape: f32[8,10], index: 2, kind: output, shape index: {}]  }
   0x1   :  { %8 = vsyncpa [#allocation6], 0 }
   0x2   :  { %9 = vsyncpa [#allocation4], 0  ;;  %s221_s9 = smov [#allocation2]   ;;  %s222_s11 = smov [#allocation5]  }
   0x3   :  { %s16_s10 = sshll.u32 %s221_s9, 4  ;;  %s25_s12 = sshll.u32 %s222_s11, 4  ;;  %s17_s10 = int_to_ptr.vmem [resolvable:$true] %s16_s10  ;;  %s26_s12 = int_to_ptr.vmem [resolvable:$true] %s25_s12 }
   0x4   :  { %s163_s13 = scalar_lea.vmem %s17_s10, 128  ;;  %p168_p1 = scmp.lt.s32.totalorder %s17_s10, %s17_s10 }
   0x5   :  { %p164_p0 = scmp.ne.s32.totalorder %s17_s10, %s163_s13  ;;  %p169_p2 = scmp.lt.s32.totalorder %s163_s13, %s163_s13 }
   0x7   :  { %p170_p3 = por %p169_p2, %p168_p1 }
   0x9   :  { %p171_p4 = pnand %p170_p3, %p164_p0 }
   0xb   :  { %174 = shalt.err (!%p171_p4)
}
   0xc   :  { %19 = dma.hbm_to_vmem [thread:$0]  %s252_s0, 128, %s17_s10, [#allocation3]  }
   0xd   :  { %s183_s16 = scalar_lea.vmem %s26_s12, 256  ;;  %p188_p6 = scmp.lt.s32.totalorder %s26_s12, %s26_s12 }
   0xe   :  { %p184_p5 = scmp.ne.s32.totalorder %s26_s12, %s183_s16  ;;  %p189_p7 = scmp.lt.s32.totalorder %s183_s16, %s183_s16 }
  0x10   :  { %p190_p8 = por %p189_p7, %p188_p6 }
  0x12   :  { %p191_p9 = pnand %p190_p8, %p184_p5 }
  0x14   :  { %194 = shalt.err (!%p191_p9)
}
  0x15   :  { %s223_s17 = smov 128   ;;  %s224_s18 = smov 8  }
  0x16   :  { %31 = dma.hbm_to_vmem [thread:$0]  %s253_s1, 256, %s26_s12, [#allocation6], %s223_s17, %s223_s17, %s224_s18  }
  0x17   :  { %215 = dma.done.wait [#allocation3], 128  }
  0x18   :  { %216 = vsyncadd [#allocation3], 4294967168 }
  0x19   :  { %217 = dma.done.wait [#allocation6], 256  }
  0x1a   :  { %218 = vsyncadd [#allocation6], 4294967040  ;;  %v225_v0 = vmov 0.0   ;;  %vm226_vm0 = vmmov 0   ;;  %vm45_vm1 = vcmask 1041408   ;;  %v39_v2 = vld [vmem:[#allocation5] sm:$0xff] }
  0x1b   :  { %141 = vmatprep.subr.mxu0 %v225_v0  ;;  %145 = vmatprep.mubr.msk.f32.mxu0 %vm226_vm0, %v225_v0  ;;  %v40_v1 = vld [vmem:[#allocation5 + $0x8] sm:$0x3]  ;;  %v38_v3 = vld [vmem:[#allocation2] sm:$0xff]  ;;  %vm41_vm2 = vcmask 80896   ;;  %s227_s0 = smov [#allocation7]  }
  0x1c   :  { %142 = vmatpush3.msk.msra.mxu0 %vm45_vm1, %v40_v1  ;;  %s126_s21 = sshll.u32 %s227_s0, 4  ;;  %s127_s21 = int_to_ptr.vmem [resolvable:$true] %s126_s21 }
  0x1d   :  { %143 = vmatprep.subr.mxu0 %v225_v0  ;;  %s195_s1 = scalar_lea.vmem %s127_s21, 128  ;;  %p200_p11 = scmp.lt.s32.totalorder %s127_s21, %s127_s21 }
  0x1e   :  { %144 = vmatpush3.msra.mxu0 %v39_v2  ;;  %p196_p10 = scmp.ne.s32.totalorder %s127_s21, %s195_s1  ;;  %p201_p12 = scmp.lt.s32.totalorder %s195_s1, %s195_s1 }
  0x1f   :  { %146 = vmatmul.mubr.msk.f32.vlgmr.msra.gmra.mxu0 %vm41_vm2, %v38_v3 }
  0x20   :  { %p202_p13 = por %p201_p12, %p200_p11 }
  0x22   :  { %p203_p0 = pnand %p202_p13, %p196_p10 }
  0xdf   :  { %v115_v4 = vpop.f32.mrf.mxu0 }
  0xe0   :  { %119 = vst.msk [vmem:[#allocation7] sm:$0xff] %vm41_vm2, %v115_v4 }
  0xe1   :  { %v147_v5 = vpop.f32.mrf.mxu0 }
  0xe2   :  { %206 = shalt.err (!%p203_p0)
}
  0xe3   :  { %129 = dma.vmem_to_hbm [thread:$0]  %s127_s21, 128, %s254_s2, [#allocation4]  }
  0xe4   :  { %219 = dma.done.wait [#allocation4], 128  }
  0xe5   :  { %220 = vsyncadd [#allocation4], 4294967168 }
  0xe6   :  { %133 = vsyncpa [#allocation3], 1 }
  0xe7   :  { %134 = vsyncpa [#allocation6], 1 }
  0xe8   :  { %135 = vsyncpa [#allocation4], 1 }

</bundles_post_ra>
